<compile_context>
chip_gen: v7x
topology: tpu7x:2x2x1
jax: 0.10.0
libtpu: 0.0.40
codegen_flags: <defaults>
</compile_context>

<pallas_src>
import functools

import jax
import jax.numpy as jnp
import numpy as np
from jax import lax
from jax.experimental import pallas as pl
from jax.experimental.pallas import tpu as pltpu


def _round_up(x, m):
    return (x + m - 1) // m * m


# ---------------------------------------------------------------------------
# Pallas kernels
# ---------------------------------------------------------------------------
def _gemm_bias_kernel(x_ref, w_ref, b_ref, o_ref, *, relu):
    # x: (bm, Kp) bf16, w: (Kp, Np) bf16, b: (1, Np) f32  -> o: (bm, Np) f32
    acc = jnp.dot(x_ref[...], w_ref[...], preferred_element_type=jnp.float32)
    acc = acc + b_ref[...]
    if relu:
        acc = jnp.maximum(acc, 0.0)
    o_ref[...] = acc.astype(o_ref.dtype)


def _fc_kernel(x_ref, w1_ref, b1_ref, w2_ref, b2_ref, w3_ref, b3_ref, o_ref):
    # Fused Linear+ReLU -> Linear+ReLU -> Linear (all lane dims padded to 128).
    h = jnp.dot(x_ref[...], w1_ref[...], preferred_element_type=jnp.float32) + b1_ref[...]
    h = jnp.maximum(h, 0.0).astype(jnp.bfloat16)
    h = jnp.dot(h, w2_ref[...], preferred_element_type=jnp.float32) + b2_ref[...]
    h = jnp.maximum(h, 0.0).astype(jnp.bfloat16)
    out = jnp.dot(h, w3_ref[...], preferred_element_type=jnp.float32) + b3_ref[...]
    o_ref[...] = out.astype(o_ref.dtype)


# ---------------------------------------------------------------------------
# Pallas wrappers
# ---------------------------------------------------------------------------
def matmul_bias(x, w, b, *, relu=False, block_m=512):
    """(M,K) @ (K,N) + b, tiled over M, bf16 operands, f32 accumulation.

    Inputs are zero-padded so K is a multiple of 16 and N a multiple of 128
    (lane-dense output stores); the result is sliced back to (M, N) f32.
    """
    M, K = x.shape
    K2, N = w.shape
    assert K == K2
    Kp = _round_up(K, 16)    # bf16 sublane packing
    Np = _round_up(N, 128)   # lane-dense output / bias
    bm = min(block_m, _round_up(M, 256))
    Mp = _round_up(M, bm)

    xp = jnp.pad(x.astype(jnp.bfloat16), ((0, Mp - M), (0, Kp - K)))
    wp = jnp.pad(w.astype(jnp.bfloat16), ((0, Kp - K), (0, Np - N)))
    bp = jnp.pad(b.astype(jnp.float32), (0, Np - N)).reshape(1, Np)

    grid = (Mp // bm,)
    cost = pl.CostEstimate(
        flops=2 * Mp * Kp * Np,
        transcendentals=0,
        bytes_accessed=xp.size * 2 + wp.size * 2 + bp.size * 4 + Mp * Np * 4,
    )
    out = pl.pallas_call(
        functools.partial(_gemm_bias_kernel, relu=relu),
        out_shape=jax.ShapeDtypeStruct((Mp, Np), jnp.float32),
        grid=grid,
        in_specs=[
            pl.BlockSpec((bm, Kp), lambda i: (i, 0)),
            pl.BlockSpec((Kp, Np), lambda i: (0, 0)),   # weights stay VMEM-resident
            pl.BlockSpec((1, Np), lambda i: (0, 0)),    # bias stays VMEM-resident
        ],
        out_specs=pl.BlockSpec((bm, Np), lambda i: (i, 0)),
        compiler_params=pltpu.CompilerParams(dimension_semantics=("parallel",)),
        cost_estimate=cost,
    )(xp, wp, bp)
    return out[:M, :N]


def fc_stack(x, fc_params, *, block_b=256):
    """Fused Linear(400,120)+ReLU -> Linear(120,84)+ReLU -> Linear(84,10)."""
    (w1, b1), (w2, b2), (w3, b3) = fc_params
    B, D0 = x.shape
    D1, D2, D3 = w1.shape[1], w2.shape[1], w3.shape[1]
    D0p = _round_up(D0, 16)
    D1p = _round_up(D1, 128)
    D2p = _round_up(D2, 128)
    D3p = _round_up(D3, 128)
    bb = min(block_b, _round_up(B, 8))
    Bp = _round_up(B, bb)

    xp = jnp.pad(x.astype(jnp.bfloat16), ((0, Bp - B), (0, D0p - D0)))
    w1p = jnp.pad(w1.astype(jnp.bfloat16), ((0, D0p - D0), (0, D1p - D1)))
    b1p = jnp.pad(b1.astype(jnp.float32), (0, D1p - D1)).reshape(1, D1p)
    w2p = jnp.pad(w2.astype(jnp.bfloat16), ((0, D1p - D1), (0, D2p - D2)))
    b2p = jnp.pad(b2.astype(jnp.float32), (0, D2p - D2)).reshape(1, D2p)
    w3p = jnp.pad(w3.astype(jnp.bfloat16), ((0, D2p - D2), (0, D3p - D3)))
    b3p = jnp.pad(b3.astype(jnp.float32), (0, D3p - D3)).reshape(1, D3p)

    out = pl.pallas_call(
        _fc_kernel,
        out_shape=jax.ShapeDtypeStruct((Bp, D3p), jnp.float32),
        grid=(Bp // bb,),
        in_specs=[
            pl.BlockSpec((bb, D0p), lambda i: (i, 0)),
            pl.BlockSpec((D0p, D1p), lambda i: (0, 0)),  # weights resident across batch tiles
            pl.BlockSpec((1, D1p), lambda i: (0, 0)),
            pl.BlockSpec((D1p, D2p), lambda i: (0, 0)),
            pl.BlockSpec((1, D2p), lambda i: (0, 0)),
            pl.BlockSpec((D2p, D3p), lambda i: (0, 0)),
            pl.BlockSpec((1, D3p), lambda i: (0, 0)),
        ],
        out_specs=pl.BlockSpec((bb, D3p), lambda i: (i, 0)),
        compiler_params=pltpu.CompilerParams(dimension_semantics=("parallel",)),
    )(xp, w1p, b1p, w2p, b2p, w3p, b3p)
    return out[:B, :D3]


# ---------------------------------------------------------------------------
# Glue: im2col, pooling, flatten
# ---------------------------------------------------------------------------
def conv2d_valid(x, w, b):
    """x: (B,H,W,Cin), w: (KH,KW,Cin,Cout), b: (Cout,). stride=1, padding=0."""
    B, H, W, Cin = x.shape
    KH, KW, _, Cout = w.shape
    OH, OW = H - KH + 1, W - KW + 1
    # TODO(synk): replace im2col glue with an implicit-GEMM conv kernel (in-kernel
    # tap loop over the 25 (i,j) offsets) to avoid the KH*KW patch expansion at
    # large batch sizes.
    cols = [x[:, i:i + OH, j:j + OW, :] for i in range(KH) for j in range(KW)]
    patches = jnp.stack(cols, axis=3).reshape(B * OH * OW, KH * KW * Cin)
    wmat = w.reshape(KH * KW * Cin, Cout)
    y = matmul_bias(patches, wmat, b, relu=False)  # Pallas GEMM hot path
    return y.reshape(B, OH, OW, Cout)


def maxpool2x2(y):
    """(B,H,W,C) -> (B,H//2,W//2,C) via strided slabs; XLA fuses the maxes."""
    return jnp.maximum(
        jnp.maximum(y[:, 0::2, 0::2, :], y[:, 0::2, 1::2, :]),
        jnp.maximum(y[:, 1::2, 0::2, :], y[:, 1::2, 1::2, :]),
    )


def lenet5_forward(x_nchw, params):
    x = jnp.transpose(x_nchw, (0, 2, 3, 1))              # NCHW -> NHWC (B,32,32,3)
    x = conv2d_valid(x, *params["conv1"])                # (B,28,28,6)  (no ReLU in conv_unit)
    x = maxpool2x2(x)                                    # (B,14,14,6)
    x = conv2d_valid(x, *params["conv2"])                # (B,10,10,16)
    x = maxpool2x2(x)                                    # (B,5,5,16)
    B = x.shape[0]
    # match torch's NCHW flatten order: (C,H,W)
    x = jnp.transpose(x, (0, 3, 1, 2)).reshape(B, 16 * 5 * 5)
    return fc_stack(x, params["fc"])                     # (B,10) logits


# ---------------------------------------------------------------------------
# Deterministic parameter init (torch-like uniform(-1/sqrt(fan_in), 1/sqrt(fan_in)))
# ---------------------------------------------------------------------------
def init_params(key):
    def u(k, shape, fan_in):
        bound = 1.0 / np.sqrt(fan_in)
        return jax.random.uniform(k, shape, jnp.float32, -bound, bound)

    ks = jax.random.split(key, 10)
    return {
        "conv1": (u(ks[0], (5, 5, 3, 6), 75), u(ks[1], (6,), 75)),
        "conv2": (u(ks[2], (5, 5, 6, 16), 150), u(ks[3], (16,), 150)),
        "fc": (
            (u(ks[4], (400, 120), 400), u(ks[5], (120,), 400)),
            (u(ks[6], (120, 84), 120), u(ks[7], (84,), 120)),
            (u(ks[8], (84, 10), 84), u(ks[9], (10,), 84)),
        ),
    }


# ---------------------------------------------------------------------------
# Pure-JAX reference (independent ops) for a sanity check
# ---------------------------------------------------------------------------
def lenet5_reference(x_nchw, params):
    x = jnp.transpose(x_nchw, (0, 2, 3, 1))

    def conv(x, w, b):
        y = lax.conv_general_dilated(
            x, w, (1, 1), "VALID",
            dimension_numbers=("NHWC", "HWIO", "NHWC"),
            precision=lax.Precision.HIGHEST,
        )
        return y + b

    def pool(x):
        return lax.reduce_window(x, -jnp.inf, lax.max, (1, 2, 2, 1), (1, 2, 2, 1), "VALID")

    x = pool(conv(x, *params["conv1"]))
    x = pool(conv(x, *params["conv2"]))
    B = x.shape[0]
    x = jnp.transpose(x, (0, 3, 1, 2)).reshape(B, 400)
    (w1, b1), (w2, b2), (w3, b3) = params["fc"]
    hp = lax.Precision.HIGHEST
    h = jnp.maximum(jnp.dot(x, w1, precision=hp) + b1, 0.0)
    h = jnp.maximum(jnp.dot(h, w2, precision=hp) + b2, 0.0)
    return jnp.dot(h, w3, precision=hp) + b3


if __name__ == "__main__":
    key = jax.random.PRNGKey(0)
    pkey, xkey = jax.random.split(key)
    params = init_params(pkey)
    x = jax.random.normal(xkey, (2, 3, 32, 32), jnp.float32)  # NCHW, CIFAR-10 sized

    out = jax.jit(lenet5_forward)(x, params)
    out = jax.block_until_ready(out)
    assert out.shape == (2, 10)

    ref = lenet5_reference(x, params)
    # bf16 operands / f32 accumulation vs. f32-HIGHEST reference.
    np.testing.assert_allclose(np.asarray(out), np.asarray(ref), rtol=3e-2, atol=3e-2)
    print("KERNEL_OK")
</pallas_src>

<mosaic_0001>
module attributes {stable_mosaic.version = 11 : i64} {
  func.func @_gemm_bias_kernel(%arg0: i32, %arg1: memref<512x80xbf16, #tpu.memory_space<vmem>>, %arg2: memref<80x128xbf16, #tpu.memory_space<vmem>>, %arg3: memref<1x128xf32, #tpu.memory_space<vmem>>, %arg4: memref<512x128xf32, #tpu.memory_space<vmem>>) attributes {dimension_semantics = [#tpu.dimension_semantics<parallel>], iteration_bounds = array<i64: 4>, scalar_prefetch = 0 : i64, scratch_operands = 0 : i64, tpu.core_type = #tpu.core_type<tc>, window_params = [{transform_indices = @transform_0, window_bounds = array<i64: 512, 80>}, {pipeline_mode = #tpu.pipeline_mode<synchronous>, transform_indices = @transform_1, window_bounds = array<i64: 80, 128>}, {pipeline_mode = #tpu.pipeline_mode<synchronous>, transform_indices = @transform_2, window_bounds = array<i64: 1, 128>}, {transform_indices = @transform_3, window_bounds = array<i64: 512, 128>}]} {
    %c0 = arith.constant 0 : index
    %c0_0 = arith.constant 0 : index
    %0 = vector.load %arg1[%c0, %c0_0] : memref<512x80xbf16, #tpu.memory_space<vmem>>, vector<512x80xbf16>
    %c0_1 = arith.constant 0 : index
    %c0_2 = arith.constant 0 : index
    %1 = vector.load %arg2[%c0_1, %c0_2] : memref<80x128xbf16, #tpu.memory_space<vmem>>, vector<80x128xbf16>
    %cst = arith.constant dense<0.000000e+00> : vector<512x128xf32>
    %2 = tpu.matmul %0, %1, %cst {dimension_numbers = #tpu.dot_dimension_numbers<[1], [0], [0], [1], [0, 0, 1, 1], [], []>} : vector<512x80xbf16>, vector<80x128xbf16>, vector<512x128xf32> -> vector<512x128xf32>
    %c0_3 = arith.constant 0 : index
    %c0_4 = arith.constant 0 : index
    %3 = vector.load %arg3[%c0_3, %c0_4] : memref<1x128xf32, #tpu.memory_space<vmem>>, vector<1x128xf32>
    %4 = vector.broadcast %3 : vector<1x128xf32> to vector<512x128xf32>
    %5 = arith.addf %2, %4 : vector<512x128xf32>
    %c0_5 = arith.constant 0 : index
    %c0_6 = arith.constant 0 : index
    %6 = vector.load %arg4[%c0_5, %c0_6] : memref<512x128xf32, #tpu.memory_space<vmem>>, vector<512x128xf32>
    tpu.vector_store %arg4[%c0_5, %c0_6], %5 {strides = array<i32>} : memref<512x128xf32, #tpu.memory_space<vmem>>, vector<512x128xf32>,
    return
  }
  func.func @transform_0(%arg0: i32) -> (i32, i32) {
    %c0_i32 = arith.constant 0 : i32
    %c0_i32_0 = arith.constant 0 : i32
    return %arg0, %c0_i32 : i32, i32
  }
  func.func @transform_1(%arg0: i32) -> (i32, i32) {
    %c0_i32 = arith.constant 0 : i32
    %c0_i32_0 = arith.constant 0 : i32
    %c0_i32_1 = arith.constant 0 : i32
    return %c0_i32, %c0_i32_0 : i32, i32
  }
  func.func @transform_2(%arg0: i32) -> (i32, i32) {
    %c0_i32 = arith.constant 0 : i32
    %c0_i32_0 = arith.constant 0 : i32
    %c0_i32_1 = arith.constant 0 : i32
    return %c0_i32, %c0_i32_0 : i32, i32
  }
  func.func @transform_3(%arg0: i32) -> (i32, i32) {
    %c0_i32 = arith.constant 0 : i32
    %c0_i32_0 = arith.constant 0 : i32
    return %arg0, %c0_i32 : i32, i32
  }
}

module attributes {stable_mosaic.version = 11 : i64} {
  func.func @_gemm_bias_kernel(%arg0: i32, %arg1: memref<256x160xbf16, #tpu.memory_space<vmem>>, %arg2: memref<160x128xbf16, #tpu.memory_space<vmem>>, %arg3: memref<1x128xf32, #tpu.memory_space<vmem>>, %arg4: memref<256x128xf32, #tpu.memory_space<vmem>>) attributes {dimension_semantics = [#tpu.dimension_semantics<parallel>], iteration_bounds = array<i64: 1>, scalar_prefetch = 0 : i64, scratch_operands = 0 : i64, tpu.core_type = #tpu.core_type<tc>, window_params = [{transform_indices = @transform_0, window_bounds = array<i64: 256, 160>}, {pipeline_mode = #tpu.pipeline_mode<synchronous>, transform_indices = @transform_1, window_bounds = array<i64: 160, 128>}, {pipeline_mode = #tpu.pipeline_mode<synchronous>, transform_indices = @transform_2, window_bounds = array<i64: 1, 128>}, {transform_indices = @transform_3, window_bounds = array<i64: 256, 128>}]} {
    %c0 = arith.constant 0 : index
    %c0_0 = arith.constant 0 : index
    %0 = vector.load %arg1[%c0, %c0_0] : memref<256x160xbf16, #tpu.memory_space<vmem>>, vector<256x160xbf16>
    %c0_1 = arith.constant 0 : index
    %c0_2 = arith.constant 0 : index
    %1 = vector.load %arg2[%c0_1, %c0_2] : memref<160x128xbf16, #tpu.memory_space<vmem>>, vector<160x128xbf16>
    %cst = arith.constant dense<0.000000e+00> : vector<256x128xf32>
    %2 = tpu.matmul %0, %1, %cst {dimension_numbers = #tpu.dot_dimension_numbers<[1], [0], [0], [1], [0, 0, 1, 1], [], []>} : vector<256x160xbf16>, vector<160x128xbf16>, vector<256x128xf32> -> vector<256x128xf32>
    %c0_3 = arith.constant 0 : index
    %c0_4 = arith.constant 0 : index
    %3 = vector.load %arg3[%c0_3, %c0_4] : memref<1x128xf32, #tpu.memory_space<vmem>>, vector<1x128xf32>
    %4 = vector.broadcast %3 : vector<1x128xf32> to vector<256x128xf32>
    %5 = arith.addf %2, %4 : vector<256x128xf32>
    %c0_5 = arith.constant 0 : index
    %c0_6 = arith.constant 0 : index
    %6 = vector.load %arg4[%c0_5, %c0_6] : memref<256x128xf32, #tpu.memory_space<vmem>>, vector<256x128xf32>
    tpu.vector_store %arg4[%c0_5, %c0_6], %5 {strides = array<i32>} : memref<256x128xf32, #tpu.memory_space<vmem>>, vector<256x128xf32>,
    return
  }
  func.func @transform_0(%arg0: i32) -> (i32, i32) {
    %c0_i32 = arith.constant 0 : i32
    %c0_i32_0 = arith.constant 0 : i32
    return %arg0, %c0_i32 : i32, i32
  }
  func.func @transform_1(%arg0: i32) -> (i32, i32) {
    %c0_i32 = arith.constant 0 : i32
    %c0_i32_0 = arith.constant 0 : i32
    %c0_i32_1 = arith.constant 0 : i32
    return %c0_i32, %c0_i32_0 : i32, i32
  }
  func.func @transform_2(%arg0: i32) -> (i32, i32) {
    %c0_i32 = arith.constant 0 : i32
    %c0_i32_0 = arith.constant 0 : i32
    %c0_i32_1 = arith.constant 0 : i32
    return %c0_i32, %c0_i32_0 : i32, i32
  }
  func.func @transform_3(%arg0: i32) -> (i32, i32) {
    %c0_i32 = arith.constant 0 : i32
    %c0_i32_0 = arith.constant 0 : i32
    return %arg0, %c0_i32 : i32, i32
  }
}

module attributes {stable_mosaic.version = 11 : i64} {
  func.func @_fc_kernel(%arg0: i32, %arg1: memref<8x400xbf16, #tpu.memory_space<vmem>>, %arg2: memref<400x128xbf16, #tpu.memory_space<vmem>>, %arg3: memref<1x128xf32, #tpu.memory_space<vmem>>, %arg4: memref<128x128xbf16, #tpu.memory_space<vmem>>, %arg5: memref<1x128xf32, #tpu.memory_space<vmem>>, %arg6: memref<128x128xbf16, #tpu.memory_space<vmem>>, %arg7: memref<1x128xf32, #tpu.memory_space<vmem>>, %arg8: memref<8x128xf32, #tpu.memory_space<vmem>>) attributes {dimension_semantics = [#tpu.dimension_semantics<parallel>], iteration_bounds = array<i64: 1>, scalar_prefetch = 0 : i64, scratch_operands = 0 : i64, tpu.core_type = #tpu.core_type<tc>, window_params = [{transform_indices = @transform_0, window_bounds = array<i64: 8, 400>}, {pipeline_mode = #tpu.pipeline_mode<synchronous>, transform_indices = @transform_1, window_bounds = array<i64: 400, 128>}, {pipeline_mode = #tpu.pipeline_mode<synchronous>, transform_indices = @transform_2, window_bounds = array<i64: 1, 128>}, {pipeline_mode = #tpu.pipeline_mode<synchronous>, transform_indices = @transform_3, window_bounds = array<i64: 128, 128>}, {pipeline_mode = #tpu.pipeline_mode<synchronous>, transform_indices = @transform_4, window_bounds = array<i64: 1, 128>}, {pipeline_mode = #tpu.pipeline_mode<synchronous>, transform_indices = @transform_5, window_bounds = array<i64: 128, 128>}, {pipeline_mode = #tpu.pipeline_mode<synchronous>, transform_indices = @transform_6, window_bounds = array<i64: 1, 128>}, {transform_indices = @transform_7, window_bounds = array<i64: 8, 128>}]} {
    %c0 = arith.constant 0 : index
    %c0_0 = arith.constant 0 : index
    %0 = vector.load %arg1[%c0, %c0_0] : memref<8x400xbf16, #tpu.memory_space<vmem>>, vector<8x400xbf16>
    %c0_1 = arith.constant 0 : index
    %c0_2 = arith.constant 0 : index
    %1 = vector.load %arg2[%c0_1, %c0_2] : memref<400x128xbf16, #tpu.memory_space<vmem>>, vector<400x128xbf16>
    %cst = arith.constant dense<0.000000e+00> : vector<8x128xf32>
    %2 = tpu.matmul %0, %1, %cst {dimension_numbers = #tpu.dot_dimension_numbers<[1], [0], [0], [1], [0, 0, 1, 1], [], []>} : vector<8x400xbf16>, vector<400x128xbf16>, vector<8x128xf32> -> vector<8x128xf32>
    %c0_3 = arith.constant 0 : index
    %c0_4 = arith.constant 0 : index
    %3 = vector.load %arg3[%c0_3, %c0_4] : memref<1x128xf32, #tpu.memory_space<vmem>>, vector<1x128xf32>
    %4 = vector.broadcast %3 : vector<1x128xf32> to vector<8x128xf32>
    %5 = arith.addf %2, %4 : vector<8x128xf32>
    %cst_5 = arith.constant 0.000000e+00 : f32
    %6 = vector.broadcast %cst_5 : f32 to vector<8x128xf32>
    %7 = arith.maximumf %5, %6 : vector<8x128xf32>
    %8 = arith.truncf %7 : vector<8x128xf32> to vector<8x128xbf16>
    %c0_6 = arith.constant 0 : index
    %c0_7 = arith.constant 0 : index
    %9 = vector.load %arg4[%c0_6, %c0_7] : memref<128x128xbf16, #tpu.memory_space<vmem>>, vector<128x128xbf16>
    %cst_8 = arith.constant dense<0.000000e+00> : vector<8x128xf32>
    %10 = tpu.matmul %8, %9, %cst_8 {dimension_numbers = #tpu.dot_dimension_numbers<[1], [0], [0], [1], [0, 0, 1, 1], [], []>} : vector<8x128xbf16>, vector<128x128xbf16>, vector<8x128xf32> -> vector<8x128xf32>
    %c0_9 = arith.constant 0 : index
    %c0_10 = arith.constant 0 : index
    %11 = vector.load %arg5[%c0_9, %c0_10] : memref<1x128xf32, #tpu.memory_space<vmem>>, vector<1x128xf32>
    %12 = vector.broadcast %11 : vector<1x128xf32> to vector<8x128xf32>
    %13 = arith.addf %10, %12 : vector<8x128xf32>
    %cst_11 = arith.constant 0.000000e+00 : f32
    %14 = vector.broadcast %cst_11 : f32 to vector<8x128xf32>
    %15 = arith.maximumf %13, %14 : vector<8x128xf32>
    %16 = arith.truncf %15 : vector<8x128xf32> to vector<8x128xbf16>
    %c0_12 = arith.constant 0 : index
    %c0_13 = arith.constant 0 : index
    %17 = vector.load %arg6[%c0_12, %c0_13] : memref<128x128xbf16, #tpu.memory_space<vmem>>, vector<128x128xbf16>
    %cst_14 = arith.constant dense<0.000000e+00> : vector<8x128xf32>
    %18 = tpu.matmul %16, %17, %cst_14 {dimension_numbers = #tpu.dot_dimension_numbers<[1], [0], [0], [1], [0, 0, 1, 1], [], []>} : vector<8x128xbf16>, vector<128x128xbf16>, vector<8x128xf32> -> vector<8x128xf32>
    %c0_15 = arith.constant 0 : index
    %c0_16 = arith.constant 0 : index
    %19 = vector.load %arg7[%c0_15, %c0_16] : memref<1x128xf32, #tpu.memory_space<vmem>>, vector<1x128xf32>
    %20 = vector.broadcast %19 : vector<1x128xf32> to vector<8x128xf32>
    %21 = arith.addf %18, %20 : vector<8x128xf32>
    %c0_17 = arith.constant 0 : index
    %c0_18 = arith.constant 0 : index
    %22 = vector.load %arg8[%c0_17, %c0_18] : memref<8x128xf32, #tpu.memory_space<vmem>>, vector<8x128xf32>
    tpu.vector_store %arg8[%c0_17, %c0_18], %21 {strides = array<i32>} : memref<8x128xf32, #tpu.memory_space<vmem>>, vector<8x128xf32>,
    return
  }
  func.func @transform_0(%arg0: i32) -> (i32, i32) {
    %c0_i32 = arith.constant 0 : i32
    %c0_i32_0 = arith.constant 0 : i32
    return %arg0, %c0_i32 : i32, i32
  }
  func.func @transform_1(%arg0: i32) -> (i32, i32) {
    %c0_i32 = arith.constant 0 : i32
    %c0_i32_0 = arith.constant 0 : i32
    %c0_i32_1 = arith.constant 0 : i32
    return %c0_i32, %c0_i32_0 : i32, i32
  }
  func.func @transform_2(%arg0: i32) -> (i32, i32) {
    %c0_i32 = arith.constant 0 : i32
    %c0_i32_0 = arith.constant 0 : i32
    %c0_i32_1 = arith.constant 0 : i32
    return %c0_i32, %c0_i32_0 : i32, i32
  }
  func.func @transform_3(%arg0: i32) -> (i32, i32) {
    %c0_i32 = arith.constant 0 : i32
    %c0_i32_0 = arith.constant 0 : i32
    %c0_i32_1 = arith.constant 0 : i32
    return %c0_i32, %c0_i32_0 : i32, i32
  }
  func.func @transform_4(%arg0: i32) -> (i32, i32) {
    %c0_i32 = arith.constant 0 : i32
    %c0_i32_0 = arith.constant 0 : i32
    %c0_i32_1 = arith.constant 0 : i32
    return %c0_i32, %c0_i32_0 : i32, i32
  }
  func.func @transform_5(%arg0: i32) -> (i32, i32) {
    %c0_i32 = arith.constant 0 : i32
    %c0_i32_0 = arith.constant 0 : i32
    %c0_i32_1 = arith.constant 0 : i32
    return %c0_i32, %c0_i32_0 : i32, i32
  }
  func.func @transform_6(%arg0: i32) -> (i32, i32) {
    %c0_i32 = arith.constant 0 : i32
    %c0_i32_0 = arith.constant 0 : i32
    %c0_i32_1 = arith.constant 0 : i32
    return %c0_i32, %c0_i32_0 : i32, i32
  }
  func.func @transform_7(%arg0: i32) -> (i32, i32) {
    %c0_i32 = arith.constant 0 : i32
    %c0_i32_0 = arith.constant 0 : i32
    return %arg0, %c0_i32 : i32, i32
  }
}

</mosaic_0001>

<bundles_post_ra>
// kernel: lenet5_forward.3
= control target key start
LH: loop header
LB: loop body
LE: loop exit
PB: predicated region body
PF: predicated region fallthrough
CT: control target
= control target key end

     0   :  { %s1227_s12 = smov 0   ;;  %s1464_s0 = inlined_call_operand.vmem [shape: bf16[2048,80], index: 0, kind: input, shape index: {}]   ;;  %s1465_s1 = inlined_call_operand.vmem [shape: bf16[80,128], index: 1, kind: input, shape index: {}]   ;;  %s1466_s2 = inlined_call_operand.vmem [shape: f32[1,128], index: 2, kind: input, shape index: {}]   ;;  %s1467_s3 = inlined_call_operand.vmem [shape: f32[2048,128], index: 3, kind: output, shape index: {}]  }
   0x1 LB: > { %s952_s13 = sadd.s32 4294967295, %s1205_s12   ;;  %p956_p0 = scmp.ge.s32.totalorder %s1205_s12, 1  ;;  %s1205_s12 = sphi %s1227_s12, %s13_s12  }
   0x2   : > { %p138_p1 = scmp.lt.s32.totalorder %s1205_s12, 5 }
   0x4   : > { %p139_p2 = pnand %p956_p0, %p138_p1 }
   0x5   : > { %v1162_v0 = vld [vmem:[%s1465_s1] sm:$0xff] (!%p139_p2)   ;;  %s957_s16 = sshll.u32 (!%p139_p2), %s952_s13, 6  ;;  %v1163_v1 = vld [vmem:[%s1465_s1 + $0x8] sm:$0xff] (!%p139_p2)   ;;  %v1164_v2 = vld [vmem:[%s1465_s1 + $0x10] sm:$0xff] (!%p139_p2)   ;;  %vm446_vm0 = vcmask (!%p139_p2), 654336  }
   0x6   : > { %142 = sbr.rel (%p139_p2) target bundleno = 300 (0x12c), region = 32  ;;  %p163_p3 = scmp.lt.s32.totalorder (!%p139_p2), %s957_s16, 255  ;;  %1070 = vmatprep.subr.bf16.mxu0 (!%p139_p2), %v1162_v0  ;;  %1144 = vmatprep.subr.bf16.mxu1 (!%p139_p2), %v1162_v0  ;;  %v1165_v3 = vld [vmem:[%s1465_s1 + $0x18] sm:$0xff] (!%p139_p2)   ;;  %v1166_v6 = vld [vmem:[%s1465_s1 + $0x20] sm:$0xff] (!%p139_p2)  }
   0x7   : > { %1071 = vmatpush3.bf16.msra.mxu0 (!%p139_p2), %v1162_v0  ;;  %1149 = vmatpush3.bf16.msra.mxu1 (!%p139_p2), %v1162_v0  ;;  %v1326_v37 = vld [vmem:[%s1466_s2] ss:$0 sm:$0xff] (!%p139_p2) }
   0x8   : > { %1072 = vmatprep.subr.bf16.mxu0 (!%p139_p2), %v1163_v1  ;;  %1145 = vmatprep.subr.bf16.mxu1 (!%p139_p2), %v1163_v1 }
   0xb   : > { %1073 = vmatpush3.bf16.msra.mxu0 (!%p139_p2), %v1163_v1  ;;  %1150 = vmatpush3.bf16.msra.mxu1 (!%p139_p2), %v1163_v1 }
   0xc   : > { %1074 = vmatprep.subr.bf16.mxu0 (!%p139_p2), %v1164_v2  ;;  %1146 = vmatprep.subr.bf16.mxu1 (!%p139_p2), %v1164_v2 }
   0xd   : > { %s1469_s16 = smov (!%p163_p3, %s957_s16), 255 }
   0xe   : > { %s958_s21 = sshll.u32 %s1469_s16, 2  ;;  %s960_s29 = sshll.u32 %s1469_s16, 3 }
   0xf   : > { %s1253_s26 = scalar_lea.vmem %s1464_s0, %s958_s21  ;;  %1075 = vmatpush3.bf16.msra.mxu0 %v1164_v2  ;;  %1151 = vmatpush3.bf16.msra.mxu1 %v1164_v2  ;;  %s1331_s7 = scalar_lea.vmem %s1467_s3, %s960_s29 }
  0x10   : > { %v1167_v4 = vld [vmem:[%s1253_s26] sm:$0xff]   ;;  %1076 = vmatprep.subr.bf16.mxu0 %v1165_v3  ;;  %1147 = vmatprep.subr.bf16.mxu1 %v1165_v3  ;;  %v1169_v7 = vld [vmem:[%s1253_s26 + $0x8] sm:$0xff]   ;;  %v1171_v9 = vld [vmem:[%s1253_s26 + $0x10] sm:$0xff]  }
  0x11   : > { %v1168_v5 = vld [vmem:[%s1253_s26 + $0x80] sm:$0xff]   ;;  %1080 = vmatprep.mubr.msk.bf16.mxu0 %vm446_vm0, %v1167_v4  ;;  %v1170_v8 = vld [vmem:[%s1253_s26 + $0x88] sm:$0xff]   ;;  %v1172_v10 = vld [vmem:[%s1253_s26 + $0x90] sm:$0xff]  }
  0x12   : > { %1112 = vmatprep.mubr.msk.bf16.mxu1 %vm446_vm0, %v1168_v5  ;;  %v1173_v11 = vld [vmem:[%s1253_s26 + $0x18] sm:$0xff]   ;;  %v1175_v13 = vld [vmem:[%s1253_s26 + $0x20] sm:$0xff]   ;;  %v1177_v15 = vld [vmem:[%s1253_s26 + $0x28] sm:$0xff]  }
  0x13   : > { %1077 = vmatpush3.bf16.msra.mxu0 %v1165_v3  ;;  %1152 = vmatpush3.bf16.msra.mxu1 %v1165_v3  ;;  %v1174_v12 = vld [vmem:[%s1253_s26 + $0x98] sm:$0xff]   ;;  %v1176_v14 = vld [vmem:[%s1253_s26 + $0xa0] sm:$0xff]   ;;  %v1178_v16 = vld [vmem:[%s1253_s26 + $0xa8] sm:$0xff]  }
  0x14   : > { %1078 = vmatprep.subr.bf16.mxu0 %v1166_v6  ;;  %1148 = vmatprep.subr.bf16.mxu1 %v1166_v6  ;;  %v1179_v17 = vld [vmem:[%s1253_s26 + $0x30] sm:$0xff]   ;;  %v1181_v19 = vld [vmem:[%s1253_s26 + $0x38] sm:$0xff]   ;;  %v1183_v21 = vld [vmem:[%s1253_s26 + $0x40] sm:$0xff]  }
  0x15   : > { %v1180_v18 = vld [vmem:[%s1253_s26 + $0xb0] sm:$0xff]   ;;  %v1182_v20 = vld [vmem:[%s1253_s26 + $0xb8] sm:$0xff]   ;;  %v1184_v22 = vld [vmem:[%s1253_s26 + $0xc0] sm:$0xff]  }
  0x16   : > { %v1185_v23 = vld [vmem:[%s1253_s26 + $0x48] sm:$0xff]   ;;  %v1187_v25 = vld [vmem:[%s1253_s26 + $0x50] sm:$0xff]   ;;  %v1189_v27 = vld [vmem:[%s1253_s26 + $0x58] sm:$0xff]  }
  0x17   : > { %1079 = vmatpush3.bf16.msra.mxu0 %v1166_v6  ;;  %1153 = vmatpush3.bf16.msra.mxu1 %v1166_v6  ;;  %v1186_v24 = vld [vmem:[%s1253_s26 + $0xc8] sm:$0xff]   ;;  %v1188_v26 = vld [vmem:[%s1253_s26 + $0xd0] sm:$0xff]   ;;  %v1190_v28 = vld [vmem:[%s1253_s26 + $0xd8] sm:$0xff]  }
  0x18   : > { %v1191_v29 = vld [vmem:[%s1253_s26 + $0x60] sm:$0xff]   ;;  %v1193_v31 = vld [vmem:[%s1253_s26 + $0x68] sm:$0xff]   ;;  %v1195_v33 = vld [vmem:[%s1253_s26 + $0x70] sm:$0xff]  }
  0x19   : > { %v1192_v30 = vld [vmem:[%s1253_s26 + $0xe0] sm:$0xff]   ;;  %v1194_v32 = vld [vmem:[%s1253_s26 + $0xe8] sm:$0xff]   ;;  %v1196_v34 = vld [vmem:[%s1253_s26 + $0xf0] sm:$0xff]  }
  0x1a   : > { %1081 = vmatmul.mubr.msk.bf16.vlgmr.msra.gmra.mrb[0].mxu0 %vm446_vm0, %v1169_v7  ;;  %1113 = vmatmul.mubr.msk.bf16.vlgmr.msra.gmra.mrb[0].mxu1 %vm446_vm0, %v1170_v8  ;;  %v1197_v35 = vld [vmem:[%s1253_s26 + $0x78] sm:$0xff]  }
  0x1b   : > { %1084 = vmatprep.mubr.msk.bf16.mxu0 %vm446_vm0, %v1171_v9  ;;  %1116 = vmatprep.mubr.msk.bf16.mxu1 %vm446_vm0, %v1172_v10  ;;  %v1198_v36 = vld [vmem:[%s1253_s26 + $0xf8] sm:$0xff]  }
  0x22   : > { %1085 = vmatmul.mubr.msk.bf16.gmra.mrb[4].mxu0 %vm446_vm0, %v1173_v11  ;;  %1117 = vmatmul.mubr.msk.bf16.gmra.mrb[4].mxu1 %vm446_vm0, %v1174_v12 }
  0x23   : > { %1088 = vmatprep.mubr.msk.bf16.mxu0 %vm446_vm0, %v1175_v13  ;;  %1120 = vmatprep.mubr.msk.bf16.mxu1 %vm446_vm0, %v1176_v14 }
  0x2a   : > { %1089 = vmatmul.mubr.msk.bf16.gmra.mrb[8].mxu0 %vm446_vm0, %v1177_v15  ;;  %1121 = vmatmul.mubr.msk.bf16.gmra.mrb[8].mxu1 %vm446_vm0, %v1178_v16 }
  0x2b   : > { %1092 = vmatprep.mubr.msk.bf16.mxu0 %vm446_vm0, %v1179_v17  ;;  %1124 = vmatprep.mubr.msk.bf16.mxu1 %vm446_vm0, %v1180_v18 }
  0x32   : > { %1093 = vmatmul.mubr.msk.bf16.gmra.mrb[12].mxu0 %vm446_vm0, %v1181_v19  ;;  %1125 = vmatmul.mubr.msk.bf16.gmra.mrb[12].mxu1 %vm446_vm0, %v1182_v20 }
  0x33   : > { %1096 = vmatprep.mubr.msk.bf16.mxu0 %vm446_vm0, %v1183_v21  ;;  %1128 = vmatprep.mubr.msk.bf16.mxu1 %vm446_vm0, %v1184_v22 }
  0x3a   : > { %1097 = vmatmul.mubr.msk.bf16.gmra.mrb[16].mxu0 %vm446_vm0, %v1185_v23  ;;  %1129 = vmatmul.mubr.msk.bf16.gmra.mrb[16].mxu1 %vm446_vm0, %v1186_v24 }
  0x3b   : > { %1100 = vmatprep.mubr.msk.bf16.mxu0 %vm446_vm0, %v1187_v25  ;;  %1132 = vmatprep.mubr.msk.bf16.mxu1 %vm446_vm0, %v1188_v26 }
  0x42   : > { %1101 = vmatmul.mubr.msk.bf16.gmra.mrb[20].mxu0 %vm446_vm0, %v1189_v27  ;;  %1133 = vmatmul.mubr.msk.bf16.gmra.mrb[20].mxu1 %vm446_vm0, %v1190_v28 }
  0x43   : > { %1104 = vmatprep.mubr.msk.bf16.mxu0 %vm446_vm0, %v1191_v29  ;;  %1136 = vmatprep.mubr.msk.bf16.mxu1 %vm446_vm0, %v1192_v30 }
  0x4a   : > { %1105 = vmatmul.mubr.msk.bf16.gmra.mrb[24].mxu0 %vm446_vm0, %v1193_v31  ;;  %1137 = vmatmul.mubr.msk.bf16.gmra.mrb[24].mxu1 %vm446_vm0, %v1194_v32 }
  0x4b   : > { %1108 = vmatprep.mubr.msk.bf16.mxu0 %vm446_vm0, %v1195_v33  ;;  %1140 = vmatprep.mubr.msk.bf16.mxu1 %vm446_vm0, %v1196_v34 }
  0x52   : > { %1109 = vmatmul.mubr.msk.bf16.gmra.mrb[28].mxu0 %vm446_vm0, %v1197_v35  ;;  %1141 = vmatmul.mubr.msk.bf16.gmra.mrb[28].mxu1 %vm446_vm0, %v1198_v36 }
  0xed   : > { %v1082_v38 = vpop.f32.mrb[0].mxu0  ;;  %v1114_v39 = vpop.f32.mrb[0].mxu1 }
  0xee   : > { %v586_v40 = vadd.f32 %v1082_v38, %v1326_v37  ;;  %v714_v41 = vadd.f32 %v1114_v39, %v1326_v37  ;;  %v577_v42 = vpop.f32.mrb[1].mxu0  ;;  %v705_v43 = vpop.f32.mrb[1].mxu1 }
  0xef   : > { %v578_v44 = vadd.f32 %v1326_v37, %v577_v42  ;;  %v706_v45 = vadd.f32 %v1326_v37, %v705_v43  ;;  %v1083_v46 = vpop.f32.mrb[2].mxu0  ;;  %v1115_v47 = vpop.f32.mrb[2].mxu1 }
  0xf0   : > { %834 = vst [vmem:[%s1331_s7 + $0x10] sm:$0xff] %v586_v40  ;;  %866 = vst [vmem:[%s1331_s7 + $0x110] sm:$0xff] %v714_v41  ;;  %v589_v48 = vadd.f32 %v1083_v46, %v1326_v37  ;;  %v717_v49 = vadd.f32 %v1115_v47, %v1326_v37  ;;  %v580_v50 = vpop.f32.mrb[3].mxu0  ;;  %v708_v51 = vpop.f32.mrb[3].mxu1 }
  0xf1   : > { %832 = vst [vmem:[%s1331_s7] sm:$0xff] %v578_v44  ;;  %864 = vst [vmem:[%s1331_s7 + $0x100] sm:$0xff] %v706_v45  ;;  %v581_v52 = vadd.f32 %v1326_v37, %v580_v50  ;;  %v709_v53 = vadd.f32 %v1326_v37, %v708_v51 }
  0xf2   : > { %835 = vst [vmem:[%s1331_s7 + $0x18] sm:$0xff] %v589_v48  ;;  %867 = vst [vmem:[%s1331_s7 + $0x118] sm:$0xff] %v717_v49 }
  0xf3   : > { %833 = vst [vmem:[%s1331_s7 + $0x8] sm:$0xff] %v581_v52  ;;  %865 = vst [vmem:[%s1331_s7 + $0x108] sm:$0xff] %v709_v53 }
  0xf5   : > { %v1086_v54 = vpop.f32.mrb[4].mxu0  ;;  %v1118_v55 = vpop.f32.mrb[4].mxu1 }
  0xf6   : > { %v602_v56 = vadd.f32 %v1086_v54, %v1326_v37  ;;  %v730_v57 = vadd.f32 %v1118_v55, %v1326_v37  ;;  %v593_v58 = vpop.f32.mrb[5].mxu0  ;;  %v721_v59 = vpop.f32.mrb[5].mxu1 }
  0xf7   : > { %v594_v60 = vadd.f32 %v1326_v37, %v593_v58  ;;  %v722_v61 = vadd.f32 %v1326_v37, %v721_v59  ;;  %v1087_v62 = vpop.f32.mrb[6].mxu0  ;;  %v1119_v63 = vpop.f32.mrb[6].mxu1 }
  0xf8   : > { %838 = vst [vmem:[%s1331_s7 + $0x30] sm:$0xff] %v602_v56  ;;  %870 = vst [vmem:[%s1331_s7 + $0x130] sm:$0xff] %v730_v57  ;;  %v605_v0 = vadd.f32 %v1087_v62, %v1326_v37  ;;  %v733_v1 = vadd.f32 %v1119_v63, %v1326_v37  ;;  %v596_v2 = vpop.f32.mrb[7].mxu0  ;;  %v724_v3 = vpop.f32.mrb[7].mxu1 }
  0xf9   : > { %836 = vst [vmem:[%s1331_s7 + $0x20] sm:$0xff] %v594_v60  ;;  %868 = vst [vmem:[%s1331_s7 + $0x120] sm:$0xff] %v722_v61  ;;  %v597_v4 = vadd.f32 %v1326_v37, %v596_v2  ;;  %v725_v5 = vadd.f32 %v1326_v37, %v724_v3 }
  0xfa   : > { %839 = vst [vmem:[%s1331_s7 + $0x38] sm:$0xff] %v605_v0  ;;  %871 = vst [vmem:[%s1331_s7 + $0x138] sm:$0xff] %v733_v1 }
  0xfb   : > { %837 = vst [vmem:[%s1331_s7 + $0x28] sm:$0xff] %v597_v4  ;;  %869 = vst [vmem:[%s1331_s7 + $0x128] sm:$0xff] %v725_v5 }
  0xfd   : > { %v1090_v6 = vpop.f32.mrb[8].mxu0  ;;  %v1122_v7 = vpop.f32.mrb[8].mxu1 }
  0xfe   : > { %v618_v8 = vadd.f32 %v1090_v6, %v1326_v37  ;;  %v746_v9 = vadd.f32 %v1122_v7, %v1326_v37  ;;  %v609_v10 = vpop.f32.mrb[9].mxu0  ;;  %v737_v11 = vpop.f32.mrb[9].mxu1 }
  0xff   : > { %v610_v12 = vadd.f32 %v1326_v37, %v609_v10  ;;  %v738_v13 = vadd.f32 %v1326_v37, %v737_v11  ;;  %v1091_v14 = vpop.f32.mrb[10].mxu0  ;;  %v1123_v15 = vpop.f32.mrb[10].mxu1 }
 0x100   : > { %842 = vst [vmem:[%s1331_s7 + $0x50] sm:$0xff] %v618_v8  ;;  %874 = vst [vmem:[%s1331_s7 + $0x150] sm:$0xff] %v746_v9  ;;  %v621_v16 = vadd.f32 %v1091_v14, %v1326_v37  ;;  %v749_v17 = vadd.f32 %v1123_v15, %v1326_v37  ;;  %v612_v18 = vpop.f32.mrb[11].mxu0  ;;  %v740_v19 = vpop.f32.mrb[11].mxu1 }
 0x101   : > { %840 = vst [vmem:[%s1331_s7 + $0x40] sm:$0xff] %v610_v12  ;;  %872 = vst [vmem:[%s1331_s7 + $0x140] sm:$0xff] %v738_v13  ;;  %v613_v20 = vadd.f32 %v1326_v37, %v612_v18  ;;  %v741_v21 = vadd.f32 %v1326_v37, %v740_v19 }
 0x102   : > { %843 = vst [vmem:[%s1331_s7 + $0x58] sm:$0xff] %v621_v16  ;;  %875 = vst [vmem:[%s1331_s7 + $0x158] sm:$0xff] %v749_v17 }
 0x103   : > { %841 = vst [vmem:[%s1331_s7 + $0x48] sm:$0xff] %v613_v20  ;;  %873 = vst [vmem:[%s1331_s7 + $0x148] sm:$0xff] %v741_v21 }
 0x105   : > { %v1094_v22 = vpop.f32.mrb[12].mxu0  ;;  %v1126_v23 = vpop.f32.mrb[12].mxu1 }
 0x106   : > { %v634_v24 = vadd.f32 %v1094_v22, %v1326_v37  ;;  %v762_v25 = vadd.f32 %v1126_v23, %v1326_v37  ;;  %v625_v26 = vpop.f32.mrb[13].mxu0  ;;  %v753_v27 = vpop.f32.mrb[13].mxu1 }
 0x107   : > { %v626_v28 = vadd.f32 %v1326_v37, %v625_v26  ;;  %v754_v29 = vadd.f32 %v1326_v37, %v753_v27  ;;  %v1095_v30 = vpop.f32.mrb[14].mxu0  ;;  %v1127_v31 = vpop.f32.mrb[14].mxu1 }
 0x108   : > { %846 = vst [vmem:[%s1331_s7 + $0x70] sm:$0xff] %v634_v24  ;;  %878 = vst [vmem:[%s1331_s7 + $0x170] sm:$0xff] %v762_v25  ;;  %v637_v32 = vadd.f32 %v1095_v30, %v1326_v37  ;;  %v765_v33 = vadd.f32 %v1127_v31, %v1326_v37  ;;  %v628_v34 = vpop.f32.mrb[15].mxu0  ;;  %v756_v35 = vpop.f32.mrb[15].mxu1 }
 0x109   : > { %844 = vst [vmem:[%s1331_s7 + $0x60] sm:$0xff] %v626_v28  ;;  %876 = vst [vmem:[%s1331_s7 + $0x160] sm:$0xff] %v754_v29  ;;  %v629_v36 = vadd.f32 %v1326_v37, %v628_v34  ;;  %v757_v38 = vadd.f32 %v1326_v37, %v756_v35 }
 0x10a   : > { %847 = vst [vmem:[%s1331_s7 + $0x78] sm:$0xff] %v637_v32  ;;  %879 = vst [vmem:[%s1331_s7 + $0x178] sm:$0xff] %v765_v33 }
 0x10b   : > { %845 = vst [vmem:[%s1331_s7 + $0x68] sm:$0xff] %v629_v36  ;;  %877 = vst [vmem:[%s1331_s7 + $0x168] sm:$0xff] %v757_v38 }
 0x10d   : > { %v1098_v39 = vpop.f32.mrb[16].mxu0  ;;  %v1130_v40 = vpop.f32.mrb[16].mxu1 }
 0x10e   : > { %v650_v41 = vadd.f32 %v1098_v39, %v1326_v37  ;;  %v778_v42 = vadd.f32 %v1130_v40, %v1326_v37  ;;  %v641_v43 = vpop.f32.mrb[17].mxu0  ;;  %v769_v44 = vpop.f32.mrb[17].mxu1 }
 0x10f   : > { %v642_v45 = vadd.f32 %v1326_v37, %v641_v43  ;;  %v770_v46 = vadd.f32 %v1326_v37, %v769_v44  ;;  %v1099_v47 = vpop.f32.mrb[18].mxu0  ;;  %v1131_v48 = vpop.f32.mrb[18].mxu1 }
 0x110   : > { %850 = vst [vmem:[%s1331_s7 + $0x90] sm:$0xff] %v650_v41  ;;  %882 = vst [vmem:[%s1331_s7 + $0x190] sm:$0xff] %v778_v42  ;;  %v653_v49 = vadd.f32 %v1099_v47, %v1326_v37  ;;  %v781_v50 = vadd.f32 %v1131_v48, %v1326_v37  ;;  %v644_v51 = vpop.f32.mrb[19].mxu0  ;;  %v772_v52 = vpop.f32.mrb[19].mxu1 }
 0x111   : > { %848 = vst [vmem:[%s1331_s7 + $0x80] sm:$0xff] %v642_v45  ;;  %880 = vst [vmem:[%s1331_s7 + $0x180] sm:$0xff] %v770_v46  ;;  %v645_v53 = vadd.f32 %v1326_v37, %v644_v51  ;;  %v773_v54 = vadd.f32 %v1326_v37, %v772_v52 }
 0x112   : > { %851 = vst [vmem:[%s1331_s7 + $0x98] sm:$0xff] %v653_v49  ;;  %883 = vst [vmem:[%s1331_s7 + $0x198] sm:$0xff] %v781_v50 }
 0x113   : > { %849 = vst [vmem:[%s1331_s7 + $0x88] sm:$0xff] %v645_v53  ;;  %881 = vst [vmem:[%s1331_s7 + $0x188] sm:$0xff] %v773_v54 }
 0x115   : > { %v1102_v55 = vpop.f32.mrb[20].mxu0  ;;  %v1134_v56 = vpop.f32.mrb[20].mxu1 }
 0x116   : > { %v666_v57 = vadd.f32 %v1102_v55, %v1326_v37  ;;  %v794_v58 = vadd.f32 %v1134_v56, %v1326_v37  ;;  %v657_v59 = vpop.f32.mrb[21].mxu0  ;;  %v785_v60 = vpop.f32.mrb[21].mxu1 }
 0x117   : > { %v658_v61 = vadd.f32 %v1326_v37, %v657_v59  ;;  %v786_v62 = vadd.f32 %v1326_v37, %v785_v60  ;;  %v1103_v63 = vpop.f32.mrb[22].mxu0  ;;  %v1135_v0 = vpop.f32.mrb[22].mxu1 }
 0x118   : > { %854 = vst [vmem:[%s1331_s7 + $0xb0] sm:$0xff] %v666_v57  ;;  %886 = vst [vmem:[%s1331_s7 + $0x1b0] sm:$0xff] %v794_v58  ;;  %v669_v1 = vadd.f32 %v1103_v63, %v1326_v37  ;;  %v797_v2 = vadd.f32 %v1135_v0, %v1326_v37  ;;  %v660_v3 = vpop.f32.mrb[23].mxu0  ;;  %v788_v4 = vpop.f32.mrb[23].mxu1 }
 0x119   : > { %852 = vst [vmem:[%s1331_s7 + $0xa0] sm:$0xff] %v658_v61  ;;  %884 = vst [vmem:[%s1331_s7 + $0x1a0] sm:$0xff] %v786_v62  ;;  %v661_v5 = vadd.f32 %v1326_v37, %v660_v3  ;;  %v789_v6 = vadd.f32 %v1326_v37, %v788_v4 }
 0x11a   : > { %855 = vst [vmem:[%s1331_s7 + $0xb8] sm:$0xff] %v669_v1  ;;  %887 = vst [vmem:[%s1331_s7 + $0x1b8] sm:$0xff] %v797_v2 }
 0x11b   : > { %853 = vst [vmem:[%s1331_s7 + $0xa8] sm:$0xff] %v661_v5  ;;  %885 = vst [vmem:[%s1331_s7 + $0x1a8] sm:$0xff] %v789_v6 }
 0x11d   : > { %v1106_v7 = vpop.f32.mrb[24].mxu0  ;;  %v1138_v8 = vpop.f32.mrb[24].mxu1 }
 0x11e   : > { %v682_v9 = vadd.f32 %v1106_v7, %v1326_v37  ;;  %v810_v10 = vadd.f32 %v1138_v8, %v1326_v37  ;;  %v673_v11 = vpop.f32.mrb[25].mxu0  ;;  %v801_v12 = vpop.f32.mrb[25].mxu1 }
 0x11f   : > { %v674_v13 = vadd.f32 %v1326_v37, %v673_v11  ;;  %v802_v14 = vadd.f32 %v1326_v37, %v801_v12  ;;  %v1107_v15 = vpop.f32.mrb[26].mxu0  ;;  %v1139_v16 = vpop.f32.mrb[26].mxu1 }
 0x120   : > { %858 = vst [vmem:[%s1331_s7 + $0xd0] sm:$0xff] %v682_v9  ;;  %890 = vst [vmem:[%s1331_s7 + $0x1d0] sm:$0xff] %v810_v10  ;;  %v685_v17 = vadd.f32 %v1107_v15, %v1326_v37  ;;  %v813_v18 = vadd.f32 %v1139_v16, %v1326_v37  ;;  %v676_v19 = vpop.f32.mrb[27].mxu0  ;;  %v804_v20 = vpop.f32.mrb[27].mxu1 }
 0x121   : > { %856 = vst [vmem:[%s1331_s7 + $0xc0] sm:$0xff] %v674_v13  ;;  %888 = vst [vmem:[%s1331_s7 + $0x1c0] sm:$0xff] %v802_v14  ;;  %v677_v21 = vadd.f32 %v1326_v37, %v676_v19  ;;  %v805_v22 = vadd.f32 %v1326_v37, %v804_v20 }
 0x122   : > { %859 = vst [vmem:[%s1331_s7 + $0xd8] sm:$0xff] %v685_v17  ;;  %891 = vst [vmem:[%s1331_s7 + $0x1d8] sm:$0xff] %v813_v18 }
 0x123   : > { %857 = vst [vmem:[%s1331_s7 + $0xc8] sm:$0xff] %v677_v21  ;;  %889 = vst [vmem:[%s1331_s7 + $0x1c8] sm:$0xff] %v805_v22 }
 0x125   : > { %v1110_v23 = vpop.f32.mrb[28].mxu0  ;;  %v1142_v24 = vpop.f32.mrb[28].mxu1 }
 0x126   : > { %v698_v25 = vadd.f32 %v1110_v23, %v1326_v37  ;;  %v826_v26 = vadd.f32 %v1142_v24, %v1326_v37  ;;  %v689_v27 = vpop.f32.mrb[29].mxu0  ;;  %v817_v28 = vpop.f32.mrb[29].mxu1 }
 0x127   : > { %v690_v29 = vadd.f32 %v1326_v37, %v689_v27  ;;  %v818_v30 = vadd.f32 %v1326_v37, %v817_v28  ;;  %v1111_v31 = vpop.f32.mrb[30].mxu0  ;;  %v1143_v32 = vpop.f32.mrb[30].mxu1 }
 0x128   : > { %862 = vst [vmem:[%s1331_s7 + $0xf0] sm:$0xff] %v698_v25  ;;  %894 = vst [vmem:[%s1331_s7 + $0x1f0] sm:$0xff] %v826_v26  ;;  %v701_v33 = vadd.f32 %v1111_v31, %v1326_v37  ;;  %v829_v34 = vadd.f32 %v1143_v32, %v1326_v37  ;;  %v692_v35 = vpop.f32.mrb[31].mxu0  ;;  %v820_v36 = vpop.f32.mrb[31].mxu1 }
 0x129   : > { %860 = vst [vmem:[%s1331_s7 + $0xe0] sm:$0xff] %v690_v29  ;;  %892 = vst [vmem:[%s1331_s7 + $0x1e0] sm:$0xff] %v818_v30  ;;  %v693_v38 = vadd.f32 %v1326_v37, %v692_v35  ;;  %v821_v39 = vadd.f32 %v1326_v37, %v820_v36 }
 0x12a   : > { %863 = vst [vmem:[%s1331_s7 + $0xf8] sm:$0xff] %v701_v33  ;;  %895 = vst [vmem:[%s1331_s7 + $0x1f8] sm:$0xff] %v829_v34 }
 0x12b   : > { %861 = vst [vmem:[%s1331_s7 + $0xe8] sm:$0xff] %v693_v38  ;;  %893 = vst [vmem:[%s1331_s7 + $0x1e8] sm:$0xff] %v821_v39 }
 0x12c PF: > { %s13_s12 = sadd.s32 1, %s1205_s12  }
 0x12d   : > { %p10_p4 = scmp.ge.s32.totalorder %s13_s12, 6  }
 0x12f   :  { %12 = sbr.rel (!%p10_p4) target bundleno = 1 (0x1), region = 62 }

// kernel: lenet5_forward.4
= control target key start
LH: loop header
LB: loop body
LE: loop exit
PB: predicated region body
PF: predicated region fallthrough
CT: control target
= control target key end

     0   :  { %v662_v0 = vmov 0   ;;  %vm278_vm0 = vcmask 261120   ;;  %s958_s1 = inlined_call_operand.vmem [shape: bf16[160,128], index: 1, kind: input, shape index: {}]   ;;  %s959_s0 = inlined_call_operand.vmem [shape: bf16[256,160], index: 0, kind: input, shape index: {}]   ;;  %s960_s2 = inlined_call_operand.vmem [shape: f32[1,128], index: 2, kind: input, shape index: {}]   ;;  %s961_s3 = inlined_call_operand.vmem [shape: f32[256,128], index: 3, kind: output, shape index: {}]  }
   0x1   :  { %327 = vmatprep.subr.bf16.mxu0 %v662_v0  ;;  %583 = vmatprep.subr.bf16.mxu1 %v662_v0  ;;  %v604_v1 = vld [vmem:[%s958_s1] sm:$0xff]   ;;  %v605_v2 = vld [vmem:[%s958_s1 + $0x8] sm:$0xff]   ;;  %v606_v3 = vld [vmem:[%s958_s1 + $0x10] sm:$0xff]  }
   0x2   :  { %328 = vmatpush1.bf16.msra.mxu0 %v604_v1  ;;  %593 = vmatpush1.bf16.msra.mxu1 %v604_v1  ;;  %v607_v4 = vld [vmem:[%s958_s1 + $0x18] sm:$0xff]   ;;  %v616_v5 = vld [vmem:[%s959_s0 + $0x4] ss:$8 sps:$4 sm:$0xff]   ;;  %v610_v9 = vld [vmem:[%s958_s1 + $0x30] sm:$0xff]  }
   0x3   :  { %329 = vmatprep.subr.bf16.mxu0 %v662_v0  ;;  %584 = vmatprep.subr.bf16.mxu1 %v662_v0  ;;  %v619_v6 = vld [vmem:[%s959_s0 + $0x84] ss:$8 sps:$4 sm:$0xff]   ;;  %v611_v10 = vld [vmem:[%s958_s1 + $0x38] sm:$0xff]   ;;  %v614_v13 = vld [vmem:[%s959_s0] ss:$8 sps:$4 sm:$0xff]  }
   0x4   :  { %567 = vmatprep.mubr.msk.bf16.mxu0 %vm278_vm0, %v616_v5  ;;  %v608_v7 = vld [vmem:[%s958_s1 + $0x20] sm:$0xff]   ;;  %575 = vmatprep.mubr.msk.bf16.mxu1 %vm278_vm0, %v619_v6  ;;  %v609_v8 = vld [vmem:[%s958_s1 + $0x28] sm:$0xff]   ;;  %v620_v15 = vld [vmem:[%s959_s0 + $0x14] ss:$8 sps:$4 sm:$0xff]  }
   0x5   :  { %v612_v11 = vld [vmem:[%s958_s1 + $0x40] sm:$0xff]   ;;  %v613_v12 = vld [vmem:[%s958_s1 + $0x48] sm:$0xff]   ;;  %v622_v16 = vld [vmem:[%s959_s0 + $0x94] ss:$8 sps:$4 sm:$0xff]  }
   0x6   :  { %330 = vmatpush1.bf16.msra.mxu0 %v605_v2  ;;  %594 = vmatpush1.bf16.msra.mxu1 %v605_v2  ;;  %v617_v14 = vld [vmem:[%s959_s0 + $0x80] ss:$8 sps:$4 sm:$0xff]   ;;  %v624_v17 = vld [vmem:[%s959_s0 + $0x10] ss:$8 sps:$4 sm:$0xff]   ;;  %v626_v19 = vld [vmem:[%s959_s0 + $0x24] ss:$8 sps:$4 sm:$0xff]  }
   0x7   :  { %331 = vmatprep.subr.bf16.mxu0 %v662_v0  ;;  %585 = vmatprep.subr.bf16.mxu1 %v662_v0  ;;  %v625_v18 = vld [vmem:[%s959_s0 + $0x90] ss:$8 sps:$4 sm:$0xff]   ;;  %v628_v20 = vld [vmem:[%s959_s0 + $0xa4] ss:$8 sps:$4 sm:$0xff]   ;;  %v630_v21 = vld [vmem:[%s959_s0 + $0x20] ss:$8 sps:$4 sm:$0xff]  }
   0x8   :  { %v631_v22 = vld [vmem:[%s959_s0 + $0xa0] ss:$8 sps:$4 sm:$0xff]   ;;  %v632_v23 = vld [vmem:[%s959_s0 + $0x34] ss:$8 sps:$4 sm:$0xff]   ;;  %v636_v25 = vld [vmem:[%s959_s0 + $0x30] ss:$8 sps:$4 sm:$0xff]  }
   0x9   :  { %v634_v24 = vld [vmem:[%s959_s0 + $0xb4] ss:$8 sps:$4 sm:$0xff]   ;;  %v637_v26 = vld [vmem:[%s959_s0 + $0xb0] ss:$8 sps:$4 sm:$0xff]   ;;  %v638_v27 = vld [vmem:[%s959_s0 + $0x44] ss:$8 sps:$4 sm:$0xff]  }
   0xa   :  { %332 = vmatpush1.bf16.msra.mxu0 %v606_v3  ;;  %595 = vmatpush1.bf16.msra.mxu1 %v606_v3  ;;  %v640_v28 = vld [vmem:[%s959_s0 + $0xc4] ss:$8 sps:$4 sm:$0xff]   ;;  %v642_v29 = vld [vmem:[%s959_s0 + $0x40] ss:$8 sps:$4 sm:$0xff]   ;;  %v644_v31 = vld [vmem:[%s959_s0 + $0x54] ss:$8 sps:$4 sm:$0xff]  }
   0xb   :  { %333 = vmatprep.subr.bf16.mxu0 %v662_v0  ;;  %586 = vmatprep.subr.bf16.mxu1 %v662_v0  ;;  %v643_v30 = vld [vmem:[%s959_s0 + $0xc0] ss:$8 sps:$4 sm:$0xff]   ;;  %v646_v32 = vld [vmem:[%s959_s0 + $0xd4] ss:$8 sps:$4 sm:$0xff]   ;;  %v648_v33 = vld [vmem:[%s959_s0 + $0x50] ss:$8 sps:$4 sm:$0xff]  }
   0xc   :  { %v649_v34 = vld [vmem:[%s959_s0 + $0xd0] ss:$8 sps:$4 sm:$0xff]   ;;  %v650_v35 = vld [vmem:[%s959_s0 + $0x64] ss:$8 sps:$4 sm:$0xff]   ;;  %v654_v37 = vld [vmem:[%s959_s0 + $0x60] ss:$8 sps:$4 sm:$0xff]  }
   0xd   :  { %v652_v36 = vld [vmem:[%s959_s0 + $0xe4] ss:$8 sps:$4 sm:$0xff]   ;;  %v655_v38 = vld [vmem:[%s959_s0 + $0xe0] ss:$8 sps:$4 sm:$0xff]   ;;  %v656_v39 = vld [vmem:[%s959_s0 + $0x74] ss:$8 sps:$4 sm:$0xff]  }
   0xe   :  { %334 = vmatpush1.bf16.msra.mxu0 %v607_v4  ;;  %596 = vmatpush1.bf16.msra.mxu1 %v607_v4  ;;  %v658_v40 = vld [vmem:[%s959_s0 + $0xf4] ss:$8 sps:$4 sm:$0xff]   ;;  %v660_v41 = vld [vmem:[%s959_s0 + $0x70] ss:$8 sps:$4 sm:$0xff]   ;;  %v828_v43 = vld [vmem:[%s960_s2] ss:$0 sm:$0xff] }
   0xf   :  { %335 = vmatprep.subr.bf16.mxu0 %v662_v0  ;;  %587 = vmatprep.subr.bf16.mxu1 %v662_v0  ;;  %v661_v42 = vld [vmem:[%s959_s0 + $0xf0] ss:$8 sps:$4 sm:$0xff]  }
  0x12   :  { %336 = vmatpush1.bf16.msra.mxu0 %v608_v7  ;;  %597 = vmatpush1.bf16.msra.mxu1 %v608_v7 }
  0x13   :  { %337 = vmatprep.subr.bf16.mxu0 %v662_v0  ;;  %588 = vmatprep.subr.bf16.mxu1 %v662_v0 }
  0x16   :  { %338 = vmatpush1.bf16.msra.mxu0 %v609_v8  ;;  %598 = vmatpush1.bf16.msra.mxu1 %v609_v8 }
  0x17   :  { %339 = vmatprep.subr.bf16.mxu0 %v662_v0  ;;  %589 = vmatprep.subr.bf16.mxu1 %v662_v0 }
  0x1a   :  { %340 = vmatpush1.bf16.msra.mxu0 %v610_v9  ;;  %599 = vmatpush1.bf16.msra.mxu1 %v610_v9 }
  0x1b   :  { %341 = vmatprep.subr.bf16.mxu0 %v662_v0  ;;  %590 = vmatprep.subr.bf16.mxu1 %v662_v0 }
  0x1e   :  { %342 = vmatpush1.bf16.msra.mxu0 %v611_v10  ;;  %600 = vmatpush1.bf16.msra.mxu1 %v611_v10 }
  0x1f   :  { %343 = vmatprep.subr.bf16.mxu0 %v662_v0  ;;  %591 = vmatprep.subr.bf16.mxu1 %v662_v0 }
  0x22   :  { %344 = vmatpush1.bf16.msra.mxu0 %v612_v11  ;;  %601 = vmatpush1.bf16.msra.mxu1 %v612_v11 }
  0x23   :  { %345 = vmatprep.subr.bf16.mxu0 %v662_v0  ;;  %592 = vmatprep.subr.bf16.mxu1 %v662_v0 }
  0x26   :  { %346 = vmatpush1.bf16.msra.mxu0 %v613_v12  ;;  %602 = vmatpush1.bf16.msra.mxu1 %v613_v12 }
  0x29   :  { %360 = vmatmul.mubr.bf16.vlgmr.msra.gmra.mrb[0].mxu0 %v614_v13  ;;  %424 = vmatmul.mubr.bf16.vlgmr.msra.gmra.mrb[0].mxu1 %v617_v14 }
  0x2a   :  { %568 = vmatprep.mubr.msk.bf16.mxu0 %vm278_vm0, %v620_v15  ;;  %576 = vmatprep.mubr.msk.bf16.mxu1 %vm278_vm0, %v622_v16 }
  0x31   :  { %368 = vmatmul.mubr.bf16.gmra.mrb[4].mxu0 %v624_v17  ;;  %432 = vmatmul.mubr.bf16.gmra.mrb[4].mxu1 %v625_v18 }
  0x32   :  { %569 = vmatprep.mubr.msk.bf16.mxu0 %vm278_vm0, %v626_v19  ;;  %577 = vmatprep.mubr.msk.bf16.mxu1 %vm278_vm0, %v628_v20 }
  0x39   :  { %376 = vmatmul.mubr.bf16.gmra.mrb[8].mxu0 %v630_v21  ;;  %440 = vmatmul.mubr.bf16.gmra.mrb[8].mxu1 %v631_v22 }
  0x3a   :  { %570 = vmatprep.mubr.msk.bf16.mxu0 %vm278_vm0, %v632_v23  ;;  %578 = vmatprep.mubr.msk.bf16.mxu1 %vm278_vm0, %v634_v24 }
  0x41   :  { %384 = vmatmul.mubr.bf16.gmra.mrb[12].mxu0 %v636_v25  ;;  %448 = vmatmul.mubr.bf16.gmra.mrb[12].mxu1 %v637_v26 }
  0x42   :  { %571 = vmatprep.mubr.msk.bf16.mxu0 %vm278_vm0, %v638_v27  ;;  %579 = vmatprep.mubr.msk.bf16.mxu1 %vm278_vm0, %v640_v28 }
  0x49   :  { %392 = vmatmul.mubr.bf16.gmra.mrb[16].mxu0 %v642_v29  ;;  %456 = vmatmul.mubr.bf16.gmra.mrb[16].mxu1 %v643_v30 }
  0x4a   :  { %572 = vmatprep.mubr.msk.bf16.mxu0 %vm278_vm0, %v644_v31  ;;  %580 = vmatprep.mubr.msk.bf16.mxu1 %vm278_vm0, %v646_v32 }
  0x51   :  { %400 = vmatmul.mubr.bf16.gmra.mrb[20].mxu0 %v648_v33  ;;  %464 = vmatmul.mubr.bf16.gmra.mrb[20].mxu1 %v649_v34 }
  0x52   :  { %573 = vmatprep.mubr.msk.bf16.mxu0 %vm278_vm0, %v650_v35  ;;  %581 = vmatprep.mubr.msk.bf16.mxu1 %vm278_vm0, %v652_v36 }
  0x59   :  { %408 = vmatmul.mubr.bf16.gmra.mrb[24].mxu0 %v654_v37  ;;  %472 = vmatmul.mubr.bf16.gmra.mrb[24].mxu1 %v655_v38 }
  0x5a   :  { %574 = vmatprep.mubr.msk.bf16.mxu0 %vm278_vm0, %v656_v39  ;;  %582 = vmatprep.mubr.msk.bf16.mxu1 %vm278_vm0, %v658_v40 }
  0x61   :  { %416 = vmatmul.mubr.bf16.gmra.mrb[28].mxu0 %v660_v41  ;;  %480 = vmatmul.mubr.bf16.gmra.mrb[28].mxu1 %v661_v42 }
  0xfc   :  { %v361_v44 = vpop.f32.mrb[0].mxu0  ;;  %v425_v45 = vpop.f32.mrb[0].mxu1 }
  0xfd   :  { %v362_v46 = vadd.f32 %v828_v43, %v361_v44  ;;  %v426_v47 = vadd.f32 %v828_v43, %v425_v45  ;;  %v363_v48 = vpop.f32.mrb[1].mxu0  ;;  %v427_v49 = vpop.f32.mrb[1].mxu1 }
  0xfe   :  { %v364_v50 = vpop.f32.mrb[2].mxu0  ;;  %v428_v51 = vpop.f32.mrb[2].mxu1 }
  0xff   :  { %488 = vst [vmem:[%s961_s3] sm:$0xff] %v362_v46  ;;  %504 = vst [vmem:[%s961_s3 + $0x80] sm:$0xff] %v426_v47  ;;  %v365_v52 = vadd.f32 %v828_v43, %v364_v50  ;;  %v429_v53 = vadd.f32 %v828_v43, %v428_v51  ;;  %v366_v54 = vpop.f32.mrb[3].mxu0  ;;  %v430_v55 = vpop.f32.mrb[3].mxu1 }
 0x101   :  { %489 = vst [vmem:[%s961_s3 + $0x8] sm:$0xff] %v365_v52  ;;  %505 = vst [vmem:[%s961_s3 + $0x88] sm:$0xff] %v429_v53 }
 0x104   :  { %v369_v56 = vpop.f32.mrb[4].mxu0  ;;  %v433_v57 = vpop.f32.mrb[4].mxu1 }
 0x105   :  { %v370_v58 = vadd.f32 %v828_v43, %v369_v56  ;;  %v434_v59 = vadd.f32 %v828_v43, %v433_v57  ;;  %v371_v60 = vpop.f32.mrb[5].mxu0  ;;  %v435_v61 = vpop.f32.mrb[5].mxu1 }
 0x106   :  { %v372_v62 = vpop.f32.mrb[6].mxu0  ;;  %v436_v63 = vpop.f32.mrb[6].mxu1 }
 0x107   :  { %490 = vst [vmem:[%s961_s3 + $0x10] sm:$0xff] %v370_v58  ;;  %506 = vst [vmem:[%s961_s3 + $0x90] sm:$0xff] %v434_v59  ;;  %v373_v0 = vadd.f32 %v828_v43, %v372_v62  ;;  %v437_v1 = vadd.f32 %v828_v43, %v436_v63  ;;  %v374_v2 = vpop.f32.mrb[7].mxu0  ;;  %v438_v3 = vpop.f32.mrb[7].mxu1 }
 0x109   :  { %491 = vst [vmem:[%s961_s3 + $0x18] sm:$0xff] %v373_v0  ;;  %507 = vst [vmem:[%s961_s3 + $0x98] sm:$0xff] %v437_v1 }
 0x10c   :  { %v377_v4 = vpop.f32.mrb[8].mxu0  ;;  %v441_v5 = vpop.f32.mrb[8].mxu1 }
 0x10d   :  { %v378_v6 = vadd.f32 %v828_v43, %v377_v4  ;;  %v442_v7 = vadd.f32 %v828_v43, %v441_v5  ;;  %v379_v8 = vpop.f32.mrb[9].mxu0  ;;  %v443_v9 = vpop.f32.mrb[9].mxu1 }
 0x10e   :  { %v380_v10 = vpop.f32.mrb[10].mxu0  ;;  %v444_v11 = vpop.f32.mrb[10].mxu1 }
 0x10f   :  { %492 = vst [vmem:[%s961_s3 + $0x20] sm:$0xff] %v378_v6  ;;  %508 = vst [vmem:[%s961_s3 + $0xa0] sm:$0xff] %v442_v7  ;;  %v381_v12 = vadd.f32 %v828_v43, %v380_v10  ;;  %v445_v13 = vadd.f32 %v828_v43, %v444_v11  ;;  %v382_v14 = vpop.f32.mrb[11].mxu0  ;;  %v446_v15 = vpop.f32.mrb[11].mxu1 }
 0x111   :  { %493 = vst [vmem:[%s961_s3 + $0x28] sm:$0xff] %v381_v12  ;;  %509 = vst [vmem:[%s961_s3 + $0xa8] sm:$0xff] %v445_v13 }
 0x114   :  { %v385_v16 = vpop.f32.mrb[12].mxu0  ;;  %v449_v17 = vpop.f32.mrb[12].mxu1 }
 0x115   :  { %v386_v18 = vadd.f32 %v828_v43, %v385_v16  ;;  %v450_v19 = vadd.f32 %v828_v43, %v449_v17  ;;  %v387_v20 = vpop.f32.mrb[13].mxu0  ;;  %v451_v21 = vpop.f32.mrb[13].mxu1 }
 0x116   :  { %v388_v22 = vpop.f32.mrb[14].mxu0  ;;  %v452_v23 = vpop.f32.mrb[14].mxu1 }
 0x117   :  { %494 = vst [vmem:[%s961_s3 + $0x30] sm:$0xff] %v386_v18  ;;  %510 = vst [vmem:[%s961_s3 + $0xb0] sm:$0xff] %v450_v19  ;;  %v389_v24 = vadd.f32 %v828_v43, %v388_v22  ;;  %v453_v25 = vadd.f32 %v828_v43, %v452_v23  ;;  %v390_v26 = vpop.f32.mrb[15].mxu0  ;;  %v454_v27 = vpop.f32.mrb[15].mxu1 }
 0x119   :  { %495 = vst [vmem:[%s961_s3 + $0x38] sm:$0xff] %v389_v24  ;;  %511 = vst [vmem:[%s961_s3 + $0xb8] sm:$0xff] %v453_v25 }
 0x11c   :  { %v393_v28 = vpop.f32.mrb[16].mxu0  ;;  %v457_v29 = vpop.f32.mrb[16].mxu1 }
 0x11d   :  { %v394_v30 = vadd.f32 %v828_v43, %v393_v28  ;;  %v458_v31 = vadd.f32 %v828_v43, %v457_v29  ;;  %v395_v32 = vpop.f32.mrb[17].mxu0  ;;  %v459_v33 = vpop.f32.mrb[17].mxu1 }
 0x11e   :  { %v396_v34 = vpop.f32.mrb[18].mxu0  ;;  %v460_v35 = vpop.f32.mrb[18].mxu1 }
 0x11f   :  { %496 = vst [vmem:[%s961_s3 + $0x40] sm:$0xff] %v394_v30  ;;  %512 = vst [vmem:[%s961_s3 + $0xc0] sm:$0xff] %v458_v31  ;;  %v397_v36 = vadd.f32 %v828_v43, %v396_v34  ;;  %v461_v37 = vadd.f32 %v828_v43, %v460_v35  ;;  %v398_v38 = vpop.f32.mrb[19].mxu0  ;;  %v462_v39 = vpop.f32.mrb[19].mxu1 }
 0x121   :  { %497 = vst [vmem:[%s961_s3 + $0x48] sm:$0xff] %v397_v36  ;;  %513 = vst [vmem:[%s961_s3 + $0xc8] sm:$0xff] %v461_v37 }
 0x124   :  { %v401_v40 = vpop.f32.mrb[20].mxu0  ;;  %v465_v41 = vpop.f32.mrb[20].mxu1 }
 0x125   :  { %v402_v42 = vadd.f32 %v828_v43, %v401_v40  ;;  %v466_v44 = vadd.f32 %v828_v43, %v465_v41  ;;  %v403_v45 = vpop.f32.mrb[21].mxu0  ;;  %v467_v46 = vpop.f32.mrb[21].mxu1 }
 0x126   :  { %v404_v47 = vpop.f32.mrb[22].mxu0  ;;  %v468_v48 = vpop.f32.mrb[22].mxu1 }
 0x127   :  { %498 = vst [vmem:[%s961_s3 + $0x50] sm:$0xff] %v402_v42  ;;  %514 = vst [vmem:[%s961_s3 + $0xd0] sm:$0xff] %v466_v44  ;;  %v405_v49 = vadd.f32 %v828_v43, %v404_v47  ;;  %v469_v50 = vadd.f32 %v828_v43, %v468_v48  ;;  %v406_v51 = vpop.f32.mrb[23].mxu0  ;;  %v470_v52 = vpop.f32.mrb[23].mxu1 }
 0x129   :  { %499 = vst [vmem:[%s961_s3 + $0x58] sm:$0xff] %v405_v49  ;;  %515 = vst [vmem:[%s961_s3 + $0xd8] sm:$0xff] %v469_v50 }
 0x12c   :  { %v409_v53 = vpop.f32.mrb[24].mxu0  ;;  %v473_v54 = vpop.f32.mrb[24].mxu1 }
 0x12d   :  { %v410_v55 = vadd.f32 %v828_v43, %v409_v53  ;;  %v474_v56 = vadd.f32 %v828_v43, %v473_v54  ;;  %v411_v57 = vpop.f32.mrb[25].mxu0  ;;  %v475_v58 = vpop.f32.mrb[25].mxu1 }
 0x12e   :  { %v412_v59 = vpop.f32.mrb[26].mxu0  ;;  %v476_v60 = vpop.f32.mrb[26].mxu1 }
 0x12f   :  { %500 = vst [vmem:[%s961_s3 + $0x60] sm:$0xff] %v410_v55  ;;  %516 = vst [vmem:[%s961_s3 + $0xe0] sm:$0xff] %v474_v56  ;;  %v413_v61 = vadd.f32 %v828_v43, %v412_v59  ;;  %v477_v62 = vadd.f32 %v828_v43, %v476_v60  ;;  %v414_v63 = vpop.f32.mrb[27].mxu0  ;;  %v478_v0 = vpop.f32.mrb[27].mxu1 }
 0x131   :  { %501 = vst [vmem:[%s961_s3 + $0x68] sm:$0xff] %v413_v61  ;;  %517 = vst [vmem:[%s961_s3 + $0xe8] sm:$0xff] %v477_v62 }
 0x134   :  { %v417_v1 = vpop.f32.mrb[28].mxu0  ;;  %v481_v2 = vpop.f32.mrb[28].mxu1 }
 0x135   :  { %v418_v3 = vadd.f32 %v828_v43, %v417_v1  ;;  %v482_v4 = vadd.f32 %v828_v43, %v481_v2  ;;  %v419_v5 = vpop.f32.mrb[29].mxu0  ;;  %v483_v6 = vpop.f32.mrb[29].mxu1 }
 0x136   :  { %v420_v7 = vpop.f32.mrb[30].mxu0  ;;  %v484_v8 = vpop.f32.mrb[30].mxu1 }
 0x137   :  { %502 = vst [vmem:[%s961_s3 + $0x70] sm:$0xff] %v418_v3  ;;  %518 = vst [vmem:[%s961_s3 + $0xf0] sm:$0xff] %v482_v4  ;;  %v421_v9 = vadd.f32 %v828_v43, %v420_v7  ;;  %v485_v10 = vadd.f32 %v828_v43, %v484_v8  ;;  %v422_v11 = vpop.f32.mrb[31].mxu0  ;;  %v486_v12 = vpop.f32.mrb[31].mxu1 }
 0x139   :  { %503 = vst [vmem:[%s961_s3 + $0x78] sm:$0xff] %v421_v9  ;;  %519 = vst [vmem:[%s961_s3 + $0xf8] sm:$0xff] %v485_v10 }

// kernel: lenet5_forward.5
= control target key start
LH: loop header
LB: loop body
LE: loop exit
PB: predicated region body
PF: predicated region fallthrough
CT: control target
= control target key end

     0   :  { %v741_v0 = vmov 0   ;;  %vm249_vm0 = vcmask 130048   ;;  %v742_v32 = vmov 0.0   ;;  %vm743_vm1 = vmmov 0   ;;  %s952_s1 = inlined_call_operand.vmem [shape: bf16[400,128], index: 1, kind: input, shape index: {}]   ;;  %s953_s0 = inlined_call_operand.vmem [shape: bf16[8,400], index: 0, kind: input, shape index: {}]   ;;  %s954_s3 = inlined_call_operand.vmem [shape: bf16[128,128], index: 3, kind: input, shape index: {}]   ;;  %s955_s5 = inlined_call_operand.vmem [shape: bf16[128,128], index: 5, kind: input, shape index: {}]   ;;  %s956_s2 = inlined_call_operand.vmem [shape: f32[1,128], index: 2, kind: input, shape index: {}]   ;;  %s957_s4 = inlined_call_operand.vmem [shape: f32[1,128], index: 4, kind: input, shape index: {}]   ;;  %s958_s6 = inlined_call_operand.vmem [shape: f32[1,128], index: 6, kind: input, shape index: {}]   ;;  %s959_s7 = inlined_call_operand.vmem [shape: f32[8,128], index: 7, kind: output, shape index: {}]  }
   0x1   :  { %293 = vmatprep.subr.bf16.mxu1 %v741_v0  ;;  %v696_v1 = vld [vmem:[%s952_s1 + $0x40] sm:$0xff]   ;;  %v699_v4 = vld [vmem:[%s952_s1 + $0x48] sm:$0xff]   ;;  %v702_v7 = vld [vmem:[%s952_s1 + $0x50] sm:$0xff]  }
   0x2   :  { %v697_v2 = vld [vmem:[%s952_s1 + $0x80] sm:$0xff]   ;;  %613 = vmatprep.subr.bf16.mxu0 %v696_v1  ;;  %v700_v5 = vld [vmem:[%s952_s1 + $0x88] sm:$0xff]   ;;  %v703_v8 = vld [vmem:[%s952_s1 + $0x90] sm:$0xff]  }
   0x3   :  { %v698_v3 = vld [vmem:[%s952_s1] sm:$0xff]   ;;  %294 = vmatpush1.bf16.msra.mxu1 %v697_v2  ;;  %v701_v6 = vld [vmem:[%s952_s1 + $0x8] sm:$0xff]   ;;  %v704_v9 = vld [vmem:[%s952_s1 + $0x10] sm:$0xff]  }
   0x4   :  { %614 = vmatpush3.bf16.msra.mxu0 %v698_v3  ;;  %295 = vmatprep.subr.bf16.mxu1 %v741_v0  ;;  %v705_v10 = vld [vmem:[%s952_s1 + $0x58] sm:$0xff]   ;;  %v708_v13 = vld [vmem:[%s952_s1 + $0x60] sm:$0xff]   ;;  %v711_v16 = vld [vmem:[%s952_s1 + $0x68] sm:$0xff]  }
   0x5   :  { %615 = vmatprep.subr.bf16.mxu0 %v699_v4  ;;  %v706_v11 = vld [vmem:[%s952_s1 + $0x98] sm:$0xff]   ;;  %v709_v14 = vld [vmem:[%s952_s1 + $0xa0] sm:$0xff]   ;;  %v712_v17 = vld [vmem:[%s952_s1 + $0xa8] sm:$0xff]  }
   0x6   :  { %v707_v12 = vld [vmem:[%s952_s1 + $0x18] sm:$0xff]   ;;  %v710_v15 = vld [vmem:[%s952_s1 + $0x20] sm:$0xff]   ;;  %v713_v18 = vld [vmem:[%s952_s1 + $0x28] sm:$0xff]  }
   0x7   :  { %296 = vmatpush1.bf16.msra.mxu1 %v700_v5  ;;  %v714_v19 = vld [vmem:[%s952_s1 + $0x70] sm:$0xff]   ;;  %v27_v22 = vld [vmem:[%s953_s0] sm:$0xff]  ;;  %v717_v23 = vld [vmem:[%s952_s1 + $0x78] sm:$0xff]  }
   0x8   :  { %616 = vmatpush3.bf16.msra.mxu0 %v701_v6  ;;  %297 = vmatprep.subr.bf16.mxu1 %v741_v0  ;;  %v715_v20 = vld [vmem:[%s952_s1 + $0xb0] sm:$0xff]   ;;  %v566_v24 = vcombine.high %v27_v22, %v27_v22  ;;  %v28_v25 = vld [vmem:[%s953_s0 + $0x8] sm:$0xff]  ;;  %v718_v27 = vld [vmem:[%s952_s1 + $0xb8] sm:$0xff]   ;;  %v565_v30 = vcombine.low %v27_v22, %v27_v22 }
   0x9   :  { %617 = vmatprep.subr.bf16.mxu0 %v702_v7  ;;  %v716_v21 = vld [vmem:[%s952_s1 + $0x30] sm:$0xff]   ;;  %v568_v26 = vcombine.high %v28_v25, %v28_v25  ;;  %v719_v28 = vld [vmem:[%s952_s1 + $0x38] sm:$0xff]   ;;  %v722_v29 = vld [vmem:[%s952_s1 + $0xc0] sm:$0xff]   ;;  %v567_v33 = vcombine.low %v28_v25, %v28_v25 }
   0xa   :  { %285 = vmatprep.mubr.bf16.mxu0 %v566_v24  ;;  %v725_v31 = vld [vmem:[%s954_s3] sm:$0xff]   ;;  %v726_v34 = vld [vmem:[%s954_s3 + $0x8] sm:$0xff]   ;;  %v727_v35 = vld [vmem:[%s954_s3 + $0x10] sm:$0xff]  }
   0xb   :  { %298 = vmatpush1.bf16.msra.mxu1 %v703_v8  ;;  %594 = vmatprep.mubr.msk.bf16.mxu1 %vm249_vm0, %v568_v26  ;;  %v728_v36 = vld [vmem:[%s954_s3 + $0x18] sm:$0xff]   ;;  %v729_v37 = vld [vmem:[%s954_s3 + $0x20] sm:$0xff]   ;;  %v730_v38 = vld [vmem:[%s954_s3 + $0x28] sm:$0xff]  }
   0xc   :  { %618 = vmatpush3.bf16.msra.mxu0 %v704_v9  ;;  %299 = vmatprep.subr.bf16.mxu1 %v741_v0  ;;  %v731_v39 = vld [vmem:[%s954_s3 + $0x30] sm:$0xff]   ;;  %v732_v40 = vld [vmem:[%s954_s3 + $0x38] sm:$0xff]   ;;  %v733_v41 = vld [vmem:[%s955_s5] sm:$0xff]  }
   0xd   :  { %619 = vmatprep.subr.bf16.mxu0 %v705_v10  ;;  %v734_v42 = vld [vmem:[%s955_s5 + $0x8] sm:$0xff]   ;;  %v735_v43 = vld [vmem:[%s955_s5 + $0x10] sm:$0xff]   ;;  %v736_v44 = vld [vmem:[%s955_s5 + $0x18] sm:$0xff]  }
   0xe   :  { %v737_v45 = vld [vmem:[%s955_s5 + $0x20] sm:$0xff]   ;;  %v738_v46 = vld [vmem:[%s955_s5 + $0x28] sm:$0xff]   ;;  %v739_v61 = vld [vmem:[%s955_s5 + $0x30] sm:$0xff]  }
   0xf   :  { %300 = vmatpush1.bf16.msra.mxu1 %v706_v11  ;;  %v564_v49 = vld [vmem:[%s956_s2] ss:$0 sm:$0xff]  ;;  %v740_v62 = vld [vmem:[%s955_s5 + $0x38] sm:$0xff]  }
  0x10   :  { %620 = vmatpush3.bf16.msra.mxu0 %v707_v12  ;;  %301 = vmatprep.subr.bf16.mxu1 %v741_v0  ;;  %v595_v63 = vld [vmem:[%s957_s4] ss:$0 sm:$0xff] }
  0x11   :  { %621 = vmatprep.subr.bf16.mxu0 %v708_v13  ;;  %v604_v7 = vld [vmem:[%s958_s6] ss:$0 sm:$0xff] }
  0x13   :  { %302 = vmatpush1.bf16.msra.mxu1 %v709_v14 }
  0x14   :  { %622 = vmatpush3.bf16.msra.mxu0 %v710_v15  ;;  %303 = vmatprep.subr.bf16.mxu1 %v741_v0 }
  0x15   :  { %623 = vmatprep.subr.bf16.mxu0 %v711_v16 }
  0x17   :  { %304 = vmatpush1.bf16.msra.mxu1 %v712_v17 }
  0x18   :  { %624 = vmatpush3.bf16.msra.mxu0 %v713_v18  ;;  %305 = vmatprep.subr.bf16.mxu1 %v741_v0 }
  0x19   :  { %625 = vmatprep.subr.bf16.mxu0 %v714_v19 }
  0x1b   :  { %306 = vmatpush1.bf16.msra.mxu1 %v715_v20 }
  0x1c   :  { %626 = vmatpush3.bf16.msra.mxu0 %v716_v21  ;;  %307 = vmatprep.subr.bf16.mxu1 %v741_v0 }
  0x1d   :  { %627 = vmatprep.subr.bf16.mxu0 %v717_v23 }
  0x1f   :  { %308 = vmatpush1.bf16.msra.mxu1 %v718_v27 }
  0x20   :  { %628 = vmatpush3.bf16.msra.mxu0 %v719_v28  ;;  %309 = vmatprep.subr.bf16.mxu1 %v741_v0 }
  0x21   :  { %653 = vmatprep.subr.bf16.mxu0 %v742_v32 }
  0x23   :  { %286 = vmatmul.mubr.bf16.vlgmr.msra.gmra.mrb[0].mxu0 %v565_v30  ;;  %310 = vmatpush1.bf16.msra.mxu1 %v722_v29 }
  0x24   :  { %654 = vmatpush3.bf16.msra.mxu0 %v725_v31  ;;  %673 = vmatprep.subr.bf16.mxu1 %v742_v32 }
  0x25   :  { %655 = vmatprep.subr.bf16.mxu0 %v742_v32  ;;  %669 = vmatprep.mubr.msk.bf16.mxu0 %vm743_vm1, %v742_v32 }
  0x26   :  { %326 = vmatmul.mubr.bf16.vlgmr.msra.gmra.mrb[0].mxu1 %v567_v33 }
  0x27   :  { %689 = vmatprep.mubr.msk.bf16.mxu1 %vm743_vm1, %v742_v32  ;;  %674 = vmatpush3.bf16.msra.mxu1 %v733_v41 }
  0x28   :  { %656 = vmatpush3.bf16.msra.mxu0 %v726_v34  ;;  %675 = vmatprep.subr.bf16.mxu1 %v742_v32 }
  0x29   :  { %657 = vmatprep.subr.bf16.mxu0 %v742_v32 }
  0x2b   :  { %676 = vmatpush3.bf16.msra.mxu1 %v734_v42 }
  0x2c   :  { %658 = vmatpush3.bf16.msra.mxu0 %v727_v35  ;;  %677 = vmatprep.subr.bf16.mxu1 %v742_v32 }
  0x2d   :  { %659 = vmatprep.subr.bf16.mxu0 %v742_v32 }
  0x2f   :  { %678 = vmatpush3.bf16.msra.mxu1 %v735_v43 }
  0x30   :  { %660 = vmatpush3.bf16.msra.mxu0 %v728_v36  ;;  %679 = vmatprep.subr.bf16.mxu1 %v742_v32 }
  0x31   :  { %661 = vmatprep.subr.bf16.mxu0 %v742_v32 }
  0x33   :  { %680 = vmatpush3.bf16.msra.mxu1 %v736_v44 }
  0x34   :  { %662 = vmatpush3.bf16.msra.mxu0 %v729_v37  ;;  %681 = vmatprep.subr.bf16.mxu1 %v742_v32 }
  0x35   :  { %663 = vmatprep.subr.bf16.mxu0 %v742_v32 }
  0x37   :  { %682 = vmatpush3.bf16.msra.mxu1 %v737_v45 }
  0x38   :  { %664 = vmatpush3.bf16.msra.mxu0 %v730_v38  ;;  %683 = vmatprep.subr.bf16.mxu1 %v742_v32 }
  0x39   :  { %665 = vmatprep.subr.bf16.mxu0 %v742_v32 }
  0x3b   :  { %684 = vmatpush3.bf16.msra.mxu1 %v738_v46 }
  0x3c   :  { %666 = vmatpush3.bf16.msra.mxu0 %v731_v39  ;;  %685 = vmatprep.subr.bf16.mxu1 %v742_v32 }
  0x3d   :  { %667 = vmatprep.subr.bf16.mxu0 %v742_v32 }
  0x3f   :  { %686 = vmatpush3.bf16.msra.mxu1 %v739_v61 }
  0x40   :  { %668 = vmatpush3.bf16.msra.mxu0 %v732_v40  ;;  %687 = vmatprep.subr.bf16.mxu1 %v742_v32 }
  0x43   :  { %688 = vmatpush3.bf16.msra.mxu1 %v740_v62 }
  0xf6   :  { %v629_v47 = vpop.f32.mrb[0].mxu0 }
  0xf7   :  { %v630_v48 = vpop.f32.mrb[1].mxu0 }
  0xf8   :  { %v631_v50 = vadd.f32 %v630_v48, %v629_v47  ;;  %v632_v51 = vpop.f32.mrb[2].mxu0 }
  0xf9   :  { %v633_v52 = vpop.f32.mrb[3].mxu0  ;;  %v327_v53 = vpop.f32.mrb[0].mxu1 }
  0xfa   :  { %v288_v54 = vadd.f32 %v631_v50, %v564_v49  ;;  %v329_v55 = vpop.f32.mrb[1].mxu1 }
  0xfb   :  { %v330_v56 = vpop.f32.mrb[2].mxu1 }
  0xfc   :  { %v328_v57 = vadd.f32 %v327_v53, %v288_v54  ;;  %v331_v58 = vpop.f32.mrb[3].mxu1 }
  0xfe   :  { %v333_v59 = vmax.f32 %v328_v57, 0.0 }
 0x100   :  { %v334_v60 = vpack.c.bf16 %v333_v59, %v333_v59 }
 0x102   :  { %670 = vmatmul.mubr.bf16.vlgmr.msra.gmra.mrb[4].mxu0 %v334_v60 }
 0x1d5   :  { %v440_v0 = vpop.f32.mrb[4].mxu0 }
 0x1d6   :  { %v441_v1 = vadd.f32 %v595_v63, %v440_v0  ;;  %v671_v2 = vpop.f32.mrb[5].mxu0 }
 0x1d7   :  { %v443_v3 = vpop.f32.mrb[6].mxu0 }
 0x1d8   :  { %v446_v4 = vmax.f32 %v441_v1, 0.0  ;;  %v672_v5 = vpop.f32.mrb[7].mxu0 }
 0x1da   :  { %v447_v6 = vpack.c.bf16 %v446_v4, %v446_v4 }
 0x1dc   :  { %690 = vmatmul.mubr.bf16.vlgmr.msra.gmra.mrb[4].mxu1 %v447_v6 }
 0x2af   :  { %v553_v8 = vpop.f32.mrb[4].mxu1 }
 0x2b0   :  { %v554_v9 = vadd.f32 %v604_v7, %v553_v8  ;;  %v691_v10 = vpop.f32.mrb[5].mxu1 }
 0x2b1   :  { %v556_v11 = vpop.f32.mrb[6].mxu1 }
 0x2b2   :  { %559 = vst [vmem:[%s959_s7] sm:$0xff] %v554_v9  ;;  %v692_v12 = vpop.f32.mrb[7].mxu1 }

</bundles_post_ra>
